<compile_context>
chip_gen: v7x
topology: tpu7x:2x2x1
jax: 0.10.0
libtpu: 0.0.40
codegen_flags: <defaults>
</compile_context>

<pallas_src>
import functools
import math

import jax
import jax.numpy as jnp
from jax.experimental import pallas as pl
from jax.experimental.pallas import tpu as pltpu


def _round_up(a, b):
    return ((a + b - 1) // b) * b


# ------------------------------ Pallas kernel ------------------------------ #

def _patch_embed_kernel(x_ref, w_ref, b_ref, g_ref, beta_ref, o_ref, *,
                        c_true, eps):
    # x_ref: (tm, K) flattened (c, ph, pw) patches; w_ref: (K, Cp); rest (1, Cp).
    x = x_ref[...].astype(jnp.float32)
    w = w_ref[...].astype(jnp.float32)
    # Patch "conv" = matmul on the MXU, f32 accumulation.
    acc = jnp.dot(x, w, preferred_element_type=jnp.float32)
    acc = acc + b_ref[...].astype(jnp.float32)
    # LayerNorm over the real channels (PyTorch semantics: biased var, eps).
    # Padded lanes (>= c_true) are exactly 0 (zero weight cols + zero bias),
    # so plain full-row sums already equal the sums over the real channels;
    # just divide by the true channel count.  Single-pass stats.
    inv_c = 1.0 / c_true
    s1 = jnp.sum(acc, axis=-1, keepdims=True)
    s2 = jnp.sum(acc * acc, axis=-1, keepdims=True)
    mu = s1 * inv_c
    var = jnp.maximum(s2 * inv_c - mu * mu, 0.0)
    y = (acc - mu) * jax.lax.rsqrt(var + eps)            # rsqrt -> EUP slot
    y = y * g_ref[...].astype(jnp.float32) + beta_ref[...].astype(jnp.float32)
    # gamma/beta are zero-padded, so padded lanes store 0; ReLU + single store.
    o_ref[...] = jnp.maximum(y, 0.0).astype(o_ref.dtype)


# ------------------------------ host wrapper -------------------------------- #

def patch_embedding(x, conv_w, conv_b, ln_g, ln_b, *, patch_size=4, tm=1024):
    """Forward of `Embedding`: returns (B, (H/P)*(W/P), C)."""
    B, Cin, H, W = x.shape
    P = patch_size
    hp, wp = H // P, W // P
    K = Cin * P * P
    C = conv_w.shape[0]
    Cp = _round_up(C, 128)                  # lane-dense output channel count

    # Non-overlapping conv == patchify (im2col) + matmul with weight (K, C).
    # TODO(synk): the interleaved (c, ph, pw) flatten has no rectangular
    # BlockSpec gather; it stays a wrapper-side transform, but allow_input_fusion
    # below lets XLA fold it into the kernel's input DMA so the (M, K) patch
    # matrix need not round-trip through HBM.
    patches = (x.reshape(B, Cin, hp, P, wp, P)
                 .transpose(0, 2, 4, 1, 3, 5)
                 .reshape(B * hp * wp, K))

    # Zero-pad the channel dim to a multiple of 128.  Zero weight columns /
    # bias keep the padded lanes at exactly 0 through matmul + bias (LN sums
    # stay correct); zero gamma/beta keep the padded outputs at 0.
    w2d = jnp.pad(conv_w.reshape(C, K).T, ((0, 0), (0, Cp - C)))   # (K, Cp)
    bias = jnp.pad(conv_b.reshape(1, C), ((0, 0), (0, Cp - C)))
    gamma = jnp.pad(ln_g.reshape(1, C), ((0, 0), (0, Cp - C)))
    beta = jnp.pad(ln_b.reshape(1, C), ((0, 0), (0, Cp - C)))

    M = B * hp * wp
    # Row tile: big enough to amortize per-step pipeline overhead, small enough
    # to keep >= ~8 grid steps when M allows (>= 4 per TensorCore on v7x).
    tm = max(8, min(tm, _round_up(pl.cdiv(M, 8), 8)))
    grid_m = pl.cdiv(M, tm)                 # Pallas masks the partial tail block

    kernel = functools.partial(_patch_embed_kernel, c_true=float(C), eps=1e-5)
    out = pl.pallas_call(
        kernel,
        out_shape=jax.ShapeDtypeStruct((M, Cp), jnp.float32),
        grid=(grid_m,),
        in_specs=[pl.BlockSpec((tm, K), lambda i: (i, 0)),
                  pl.BlockSpec((K, Cp), lambda i: (0, 0)),   # weight stays resident
                  pl.BlockSpec((1, Cp), lambda i: (0, 0)),
                  pl.BlockSpec((1, Cp), lambda i: (0, 0)),
                  pl.BlockSpec((1, Cp), lambda i: (0, 0))],
        out_specs=pl.BlockSpec((tm, Cp), lambda i: (i, 0)),
        compiler_params=pltpu.CompilerParams(
            dimension_semantics=("parallel",),               # rows independent
            allow_input_fusion=[True, False, False, False, False]),
    )(patches, w2d, bias, gamma, beta)

    return out[:, :C].reshape(B, hp * wp, C)


# ------------------------------ reference (JAX) ----------------------------- #

def reference_forward(x, conv_w, conv_b, ln_g, ln_b, *, patch_size=4):
    B, Cin, H, W = x.shape
    P = patch_size
    hp, wp = H // P, W // P
    K = Cin * P * P
    C = conv_w.shape[0]
    patches = (x.reshape(B, Cin, hp, P, wp, P)
                 .transpose(0, 2, 4, 1, 3, 5)
                 .reshape(B * hp * wp, K))
    y = jnp.dot(patches, conv_w.reshape(C, K).T,
                precision=jax.lax.Precision.HIGHEST) + conv_b
    mu = jnp.mean(y, axis=-1, keepdims=True)
    var = jnp.mean(jnp.square(y - mu), axis=-1, keepdims=True)
    y = (y - mu) * jax.lax.rsqrt(var + 1e-5) * ln_g + ln_b
    y = jnp.maximum(y, 0.0)
    return y.reshape(B, hp * wp, C)


# ----------------------------------- main ----------------------------------- #

if __name__ == "__main__":
    patch_size, C = 4, 96                                   # module defaults
    B, Cin, H, W = 2, 3, 64, 64                             # small image input

    key = jax.random.PRNGKey(0)
    kx, kw, kb = jax.random.split(key, 3)

    x = jax.random.normal(kx, (B, Cin, H, W), jnp.float32)

    # PyTorch Conv2d default init: uniform(-1/sqrt(fan_in), 1/sqrt(fan_in)).
    fan_in = Cin * patch_size * patch_size
    bound = 1.0 / math.sqrt(fan_in)
    conv_w = jax.random.uniform(kw, (C, Cin, patch_size, patch_size),
                                jnp.float32, -bound, bound)
    conv_b = jax.random.uniform(kb, (C,), jnp.float32, -bound, bound)
    ln_g = jnp.ones((C,), jnp.float32)
    ln_b = jnp.zeros((C,), jnp.float32)

    y = patch_embedding(x, conv_w, conv_b, ln_g, ln_b, patch_size=patch_size)
    y = jax.block_until_ready(y)

    hw = (H // patch_size) * (W // patch_size)
    assert y.shape == (B, hw, C), y.shape
    assert bool(jnp.isfinite(y).all())

    y_ref = jax.block_until_ready(
        reference_forward(x, conv_w, conv_b, ln_g, ln_b, patch_size=patch_size))
    assert bool(jnp.allclose(y, y_ref, atol=2e-3, rtol=2e-3)), \
        float(jnp.max(jnp.abs(y - y_ref)))

    print("KERNEL_OK")
</pallas_src>

<mosaic_0001>
module attributes {stable_mosaic.version = 11 : i64} {
  func.func @_patch_embed_kernel(%arg0: i32, %arg1: memref<64x48xf32, #tpu.memory_space<vmem>>, %arg2: memref<48x128xf32, #tpu.memory_space<vmem>>, %arg3: memref<1x128xf32, #tpu.memory_space<vmem>>, %arg4: memref<1x128xf32, #tpu.memory_space<vmem>>, %arg5: memref<1x128xf32, #tpu.memory_space<vmem>>, %arg6: memref<64x128xf32, #tpu.memory_space<vmem>>) attributes {dimension_semantics = [#tpu.dimension_semantics<parallel>], iteration_bounds = array<i64: 8>, scalar_prefetch = 0 : i64, scratch_operands = 0 : i64, tpu.core_type = #tpu.core_type<tc>, window_params = [{transform_indices = @transform_0, window_bounds = array<i64: 64, 48>}, {pipeline_mode = #tpu.pipeline_mode<synchronous>, transform_indices = @transform_1, window_bounds = array<i64: 48, 128>}, {pipeline_mode = #tpu.pipeline_mode<synchronous>, transform_indices = @transform_2, window_bounds = array<i64: 1, 128>}, {pipeline_mode = #tpu.pipeline_mode<synchronous>, transform_indices = @transform_3, window_bounds = array<i64: 1, 128>}, {pipeline_mode = #tpu.pipeline_mode<synchronous>, transform_indices = @transform_4, window_bounds = array<i64: 1, 128>}, {transform_indices = @transform_5, window_bounds = array<i64: 64, 128>}]} {
    %c0 = arith.constant 0 : index
    %c0_0 = arith.constant 0 : index
    %0 = vector.load %arg1[%c0, %c0_0] : memref<64x48xf32, #tpu.memory_space<vmem>>, vector<64x48xf32>
    %c0_1 = arith.constant 0 : index
    %c0_2 = arith.constant 0 : index
    %1 = vector.load %arg2[%c0_1, %c0_2] : memref<48x128xf32, #tpu.memory_space<vmem>>, vector<48x128xf32>
    %cst = arith.constant dense<0.000000e+00> : vector<64x128xf32>
    %2 = tpu.matmul %0, %1, %cst {dimension_numbers = #tpu.dot_dimension_numbers<[1], [0], [0], [1], [0, 0, 1, 1], [], []>} : vector<64x48xf32>, vector<48x128xf32>, vector<64x128xf32> -> vector<64x128xf32>
    %c0_3 = arith.constant 0 : index
    %c0_4 = arith.constant 0 : index
    %3 = vector.load %arg3[%c0_3, %c0_4] : memref<1x128xf32, #tpu.memory_space<vmem>>, vector<1x128xf32>
    %4 = vector.broadcast %3 : vector<1x128xf32> to vector<64x128xf32>
    %5 = arith.addf %2, %4 : vector<64x128xf32>
    %cst_5 = arith.constant dense<0.000000e+00> : vector<64xf32>
    %6 = vector.multi_reduction <add>, %5, %cst_5 [1] : vector<64x128xf32> to vector<64xf32>
    %7 = vector.shape_cast %6 : vector<64xf32> to vector<64x1xf32>
    %8 = arith.mulf %5, %5 : vector<64x128xf32>
    %cst_6 = arith.constant dense<0.000000e+00> : vector<64xf32>
    %9 = vector.multi_reduction <add>, %8, %cst_6 [1] : vector<64x128xf32> to vector<64xf32>
    %10 = vector.shape_cast %9 : vector<64xf32> to vector<64x1xf32>
    %cst_7 = arith.constant 0.010416667 : f32
    %11 = vector.broadcast %cst_7 : f32 to vector<64x1xf32>
    %12 = arith.mulf %7, %11 : vector<64x1xf32>
    %cst_8 = arith.constant 0.010416667 : f32
    %13 = vector.broadcast %cst_8 : f32 to vector<64x1xf32>
    %14 = arith.mulf %10, %13 : vector<64x1xf32>
    %15 = arith.mulf %12, %12 : vector<64x1xf32>
    %16 = arith.subf %14, %15 : vector<64x1xf32>
    %cst_9 = arith.constant 0.000000e+00 : f32
    %17 = vector.broadcast %cst_9 : f32 to vector<64x1xf32>
    %18 = arith.maximumf %16, %17 : vector<64x1xf32>
    %19 = vector.broadcast %12 : vector<64x1xf32> to vector<64x128xf32>
    %20 = arith.subf %5, %19 : vector<64x128xf32>
    %cst_10 = arith.constant 9.99999974E-6 : f32
    %21 = vector.broadcast %cst_10 : f32 to vector<64x1xf32>
    %22 = arith.addf %18, %21 : vector<64x1xf32>
    %23 = math.rsqrt %22 : vector<64x1xf32>
    %24 = vector.broadcast %23 : vector<64x1xf32> to vector<64x128xf32>
    %25 = arith.mulf %20, %24 : vector<64x128xf32>
    %c0_11 = arith.constant 0 : index
    %c0_12 = arith.constant 0 : index
    %26 = vector.load %arg4[%c0_11, %c0_12] : memref<1x128xf32, #tpu.memory_space<vmem>>, vector<1x128xf32>
    %27 = vector.broadcast %26 : vector<1x128xf32> to vector<64x128xf32>
    %28 = arith.mulf %25, %27 : vector<64x128xf32>
    %c0_13 = arith.constant 0 : index
    %c0_14 = arith.constant 0 : index
    %29 = vector.load %arg5[%c0_13, %c0_14] : memref<1x128xf32, #tpu.memory_space<vmem>>, vector<1x128xf32>
    %30 = vector.broadcast %29 : vector<1x128xf32> to vector<64x128xf32>
    %31 = arith.addf %28, %30 : vector<64x128xf32>
    %cst_15 = arith.constant 0.000000e+00 : f32
    %32 = vector.broadcast %cst_15 : f32 to vector<64x128xf32>
    %33 = arith.maximumf %31, %32 : vector<64x128xf32>
    %c0_16 = arith.constant 0 : index
    %c0_17 = arith.constant 0 : index
    %34 = vector.load %arg6[%c0_16, %c0_17] : memref<64x128xf32, #tpu.memory_space<vmem>>, vector<64x128xf32>
    tpu.vector_store %arg6[%c0_16, %c0_17], %33 {strides = array<i32>} : memref<64x128xf32, #tpu.memory_space<vmem>>, vector<64x128xf32>,
    return
  }
  func.func @transform_0(%arg0: i32) -> (i32, i32) {
    %c0_i32 = arith.constant 0 : i32
    %c0_i32_0 = arith.constant 0 : i32
    return %arg0, %c0_i32 : i32, i32
  }
  func.func @transform_1(%arg0: i32) -> (i32, i32) {
    %c0_i32 = arith.constant 0 : i32
    %c0_i32_0 = arith.constant 0 : i32
    %c0_i32_1 = arith.constant 0 : i32
    return %c0_i32, %c0_i32_0 : i32, i32
  }
  func.func @transform_2(%arg0: i32) -> (i32, i32) {
    %c0_i32 = arith.constant 0 : i32
    %c0_i32_0 = arith.constant 0 : i32
    %c0_i32_1 = arith.constant 0 : i32
    return %c0_i32, %c0_i32_0 : i32, i32
  }
  func.func @transform_3(%arg0: i32) -> (i32, i32) {
    %c0_i32 = arith.constant 0 : i32
    %c0_i32_0 = arith.constant 0 : i32
    %c0_i32_1 = arith.constant 0 : i32
    return %c0_i32, %c0_i32_0 : i32, i32
  }
  func.func @transform_4(%arg0: i32) -> (i32, i32) {
    %c0_i32 = arith.constant 0 : i32
    %c0_i32_0 = arith.constant 0 : i32
    %c0_i32_1 = arith.constant 0 : i32
    return %c0_i32, %c0_i32_0 : i32, i32
  }
  func.func @transform_5(%arg0: i32) -> (i32, i32) {
    %c0_i32 = arith.constant 0 : i32
    %c0_i32_0 = arith.constant 0 : i32
    return %arg0, %c0_i32 : i32, i32
  }
}

</mosaic_0001>

<bundles_post_ra>
// kernel: tpu_custom_call.1
= control target key start
LH: loop header
LB: loop body
LE: loop exit
PB: predicated region body
PF: predicated region fallthrough
CT: control target
= control target key end

     0   :  { %10 = vsyncpa [#allocation3], 0  ;;  %s1095_s0 = inlined_call_operand.vmem [shape: f32[512,48], index: 0, kind: input, shape index: {}]   ;;  %s1096_s1 = inlined_call_operand.vmem [shape: f32[48,128], index: 1, kind: input, shape index: {}]   ;;  %s1097_s2 = inlined_call_operand.vmem [shape: f32[1,128], index: 2, kind: input, shape index: {}]   ;;  %s1098_s3 = inlined_call_operand.vmem [shape: f32[1,128], index: 3, kind: input, shape index: {}]   ;;  %s1099_s4 = inlined_call_operand.vmem [shape: f32[1,128], index: 4, kind: input, shape index: {}]   ;;  %s1100_s5 = inlined_call_operand.hbm [shape: f32[512,128], index: 5, kind: output, shape index: {}]  }
   0x1   :  { %12 = vsyncpa [#allocation3 + $0x1], 0  ;;  %s845_s18 = smov 0   ;;  %s847_s19 = smov 0  }
   0x2   :  { %s849_s20 = smov 0   ;;  %s851_s21 = smov 0  }
   0x3 LB: > { %s866_s22 = sadd.s32 4294967295, %s810_s21   ;;  %s611_s23 = sadd.s32 4294967294, %s810_s21   ;;  %s810_s21 = sphi %s851_s21, %s1106_s21   ;;  %s806_s20 = sphi %s849_s20, %s1105_s20   ;;  %s802_s19 = sphi %s847_s19, %s1104_s19   ;;  %s798_s18 = sphi %s845_s18, %s1103_s18  }
   0x4   : > { %s870_s24 = sadd.s32 1, %s810_s21   ;;  %s135_s25 = sadd.s32 1, %s806_s20 }
   0x5   : > { %s132_s26 = ssub.s32 %s810_s21, %s870_s24  ;;  %p145_p0 = scmp.ne.s32.totalorder %s806_s20, %s802_s19 }
   0x6   : > { %p133_p1 = scmp.eq.s32.totalorder %s132_s26, 0  ;;  %p146_p2 = scmp.eq.s32.totalorder %s866_s22, 7 }
   0x7   : > { %p151_p3 = scmp.ne.s32.totalorder %s802_s19, %s798_s18  ;;  %p152_p4 = scmp.eq.s32.totalorder %s611_s23, 7 }
   0x8   : > { %s881_s27 = scalar_select %p133_p1, %s806_s20, %s135_s25  }
   0x9   : > { %p883_p5 = por %p146_p2, %p145_p0  ;;  %p887_p6 = por %p152_p4, %p151_p3 }
   0xa   : > { %p614_p7 = scmp.ge.s32.totalorder %s810_s21, 1  ;;  %p191_p8 = scmp.lt.s32.totalorder %s810_s21, 9 }
   0xc   : > { %p192_p9 = pnand %p614_p7, %p191_p8 }
   0xd   : > { %v234_v0 = vld [vmem:[%s1096_s1] sm:$0xff] (!%p192_p9)  ;;  %v235_v1 = vld [vmem:[%s1096_s1 + $0x8] sm:$0xff] (!%p192_p9)  ;;  %v236_v2 = vld [vmem:[%s1096_s1 + $0x10] sm:$0xff] (!%p192_p9)  ;;  %s616_s11 = sshll.u32 (!%p192_p9), %s866_s22, 3  ;;  %vm247_vm0 = vcmask (!%p192_p9), 392192   ;;  %s216_s8 = sand.u32 (!%p192_p9), 1, %s802_s19  }
   0xe   : > { %195 = sbr.rel (%p192_p9) target bundleno = 456 (0x1c8), region = 40  ;;  %v673_v3 = vpack.c.bf16 (!%p192_p9), %v235_v1, %v234_v0  ;;  %v237_v4 = vld [vmem:[%s1096_s1 + $0x18] sm:$0xff] (!%p192_p9)  ;;  %p220_p10 = scmp.lt.s32.totalorder (!%p192_p9), %s616_s11, 63  ;;  %v238_v6 = vld [vmem:[%s1096_s1 + $0x20] sm:$0xff] (!%p192_p9)  ;;  %v239_v7 = vld [vmem:[%s1096_s1 + $0x28] sm:$0xff] (!%p192_p9) }
   0xf   : > { %v677_v5 = vpack.c.bf16 (!%p192_p9), %v237_v4, %v236_v2  ;;  %v681_v8 = vpack.c.bf16 (!%p192_p9), %v239_v7, %v238_v6  ;;  %v618_v17 = vld [vmem:[%s1097_s2] ss:$0 sm:$0xff] (!%p192_p9)  ;;  %s615_s13 = sshll.u32 (!%p192_p9), %s216_s8, 6  ;;  %s634_s15 = sshll.u32 (!%p192_p9), %s866_s22, 10 }
  0x10   : > { %674 = vmatprep.subr.bf16.mxu0 (!%p192_p9), %v673_v3  ;;  %685 = vmatprep.subr.bf16.mxu1 (!%p192_p9), %v673_v3  ;;  %s1010_s14 = scalar_lea.vmem (!%p192_p9), [#allocation2], %s615_s13  ;;  %s1046_s25 = scalar_lea.hbm (!%p192_p9), %s1100_s5, %s634_s15 }
  0x11   : > { %676 = vmatpush3.bf16.msra.mxu0 (!%p192_p9), %v673_v3  ;;  %688 = vmatpush3.bf16.msra.mxu1 (!%p192_p9), %v673_v3  ;;  %s549_s16 = sshll.u32 (!%p192_p9), %s1010_s14, 4  ;;  %s1054_s22 = scalar_lea.sflag (!%p192_p9), [#allocation3], %s216_s8  ;;  %s1048_s16 = int_to_ptr.vmem [resolvable:$true] %s549_s16 }
  0x12   : > { %678 = vmatprep.subr.bf16.mxu0 (!%p192_p9), %v677_v5  ;;  %686 = vmatprep.subr.bf16.mxu1 (!%p192_p9), %v677_v5  ;;  %s748_s26 = scalar_lea.vmem (!%p192_p9), %s1048_s16, 1024 }
  0x13   : > { %p749_p11 = scmp.ne.s32.totalorder (!%p192_p9), %s1048_s16, %s748_s26 }
  0x15   : > { %s1108_s11 = smov (!%p220_p10, %s616_s11), 63  ;;  %680 = vmatpush3.bf16.msra.mxu0 %v677_v5  ;;  %689 = vmatpush3.bf16.msra.mxu1 %v677_v5  ;;  %p750_p12 = pnand %p749_p11, %p883_p5 }
  0x16   : > { %s617_s23 = sshll.u32 %s1108_s11, 3  ;;  %682 = vmatprep.subr.bf16.mxu0 %v681_v8  ;;  %687 = vmatprep.subr.bf16.mxu1 %v681_v8 }
  0x17   : > { %s223_s30 = scalar_lea.vmem %s1095_s0, %s617_s23  ;;  %p751_p13 = pneg %p750_p12 }
  0x18   : > { %v226_v9 = vld [vmem:[%s223_s30] sm:$0xff]  ;;  %v227_v11 = vld [vmem:[%s223_s30 + $0x8] sm:$0xff]  ;;  %v228_v13 = vld [vmem:[%s223_s30 + $0x10] sm:$0xff] }
  0x19   : > { %v230_v10 = vld [vmem:[%s223_s30 + $0x20] sm:$0xff]  ;;  %661 = vmatprep.mubr.msk.f32.mxu0 %vm247_vm0, %v226_v9  ;;  %684 = vmatpush3.bf16.msra.mxu0 %v681_v8  ;;  %v231_v12 = vld [vmem:[%s223_s30 + $0x28] sm:$0xff]  ;;  %v232_v14 = vld [vmem:[%s223_s30 + $0x30] sm:$0xff] }
  0x1a   : > { %667 = vmatprep.mubr.msk.f32.mxu1 %vm247_vm0, %v230_v10  ;;  %690 = vmatpush3.bf16.msra.mxu1 %v681_v8  ;;  %v229_v15 = vld [vmem:[%s223_s30 + $0x18] sm:$0xff] }
  0x1b   : > { %v233_v16 = vld [vmem:[%s223_s30 + $0x38] sm:$0xff]  ;;  %s812_s30 = smov [#allocation2]  }
  0x1c   : > { %662 = vmatmul.mubr.msk.f32.vlgmr.msra.gmra.mrb[0].mxu0 %vm247_vm0, %v227_v11  ;;  %s752_s6 = sshll.u32 %s812_s30, 4  ;;  %s753_s6 = int_to_ptr.vmem [resolvable:$false] %s752_s6 }
  0x1d   : > { %668 = vmatmul.mubr.msk.f32.vlgmr.msra.gmra.mrb[0].mxu1 %vm247_vm0, %v231_v12  ;;  %664 = vmatprep.mubr.msk.f32.mxu0 %vm247_vm0, %v228_v13  ;;  %s754_s7 = scalar_lea.vmem %s753_s6, 2048  ;;  %p755_p0 = scmp.lt.s32.totalorder %s1048_s16, %s753_s6 }
  0x1e   : > { %670 = vmatprep.mubr.msk.f32.mxu1 %vm247_vm0, %v232_v14  ;;  %p756_p1 = scmp.lt.s32.totalorder %s754_s7, %s748_s26 }
  0x20   : > { %665 = vmatmul.mubr.msk.f32.gmra.mrb[2].mxu0 %vm247_vm0, %v229_v15  ;;  %p757_p2 = por %p756_p1, %p755_p0 }
  0x21   : > { %671 = vmatmul.mubr.msk.f32.gmra.mrb[2].mxu1 %vm247_vm0, %v233_v16 }
  0x22   : > { %p758_p3 = pnand %p757_p2, %p751_p13 }
  0xef   : > { %v663_v18 = vpop.f32.mrb[0].mxu0 }
  0xf0   : > { %v669_v19 = vpop.f32.mrb[0].mxu1  ;;  %v926_v20 = vadd.f32 %v663_v18, %v618_v17  ;;  %v338_v22 = vpop.f32.mrb[1].mxu0 }
  0xf1   : > { %v928_v21 = vadd.f32 %v669_v19, %v618_v17  ;;  %v358_v23 = vpop.f32.mrb[1].mxu1  ;;  %v932_v26 = vadd.f32 %v618_v17, %v338_v22  ;;  %v988_v19 = vld [vmem:[%s1099_s4] ss:$0 sm:$0xff] }
  0xf2   : > { %379 = vadd.xlane.f32.xlu0 %v926_v20  ;;  %v394_v27 = vmul.f32 %v926_v20, %v926_v20  ;;  %v937_v30 = vadd.f32 %v618_v17, %v358_v23 }
  0xf3   : > { %387 = vadd.xlane.f32.xlu1 %v928_v21  ;;  %v666_v24 = vpop.f32.mrb[2].mxu0  ;;  %v398_v31 = vmul.f32 %v928_v21, %v928_v21  ;;  %v393_v33 = vmul.f32 %v932_v26, %v932_v26 }
  0xf4   : > { %v672_v25 = vpop.f32.mrb[2].mxu1  ;;  %v348_v28 = vpop.f32.mrb[3].mxu0  ;;  %v941_v32 = vadd.f32 %v666_v24, %v618_v17  ;;  %v397_v35 = vmul.f32 %v937_v30, %v937_v30 }
  0xf5   : > { %v368_v29 = vpop.f32.mrb[3].mxu1  ;;  %v946_v34 = vadd.f32 %v672_v25, %v618_v17  ;;  %v952_v36 = vadd.f32 %v618_v17, %v348_v28 }
  0xf6   : > { %377 = vadd.xlane.f32.xlu0 %v932_v26  ;;  %v954_v37 = vadd.f32 %v618_v17, %v368_v29  ;;  %v396_v38 = vmul.f32 %v941_v32, %v941_v32  ;;  %v983_v17 = vld [vmem:[%s1098_s3] ss:$0 sm:$0xff] }
  0xf7   : > { %403 = vadd.xlane.f32.xlu1 %v394_v27  ;;  %v395_v39 = vmul.f32 %v952_v36, %v952_v36  ;;  %v400_v40 = vmul.f32 %v946_v34, %v946_v34 }
  0xf8   : > { %v399_v41 = vmul.f32 %v954_v37, %v954_v37 }
  0xfa   : > { %385 = vadd.xlane.f32.xlu0 %v937_v30 }
  0xfb   : > { %411 = vadd.xlane.f32.xlu1 %v398_v31 }
  0xfe   : > { %401 = vadd.xlane.f32.xlu0 %v393_v33 }
  0xff   : > { %383 = vadd.xlane.f32.xlu1 %v941_v32 }
 0x102   : > { %409 = vadd.xlane.f32.xlu0 %v397_v35 }
 0x103   : > { %391 = vadd.xlane.f32.xlu1 %v946_v34 }
 0x106   : > { %389 = vadd.xlane.f32.xlu0 %v954_v37 }
 0x107   : > { %381 = vadd.xlane.f32.xlu1 %v952_v36 }
 0x10a   : > { %405 = vadd.xlane.f32.xlu0 %v395_v39 }
 0x10b   : > { %407 = vadd.xlane.f32.xlu1 %v396_v38 }
 0x10e   : > { %413 = vadd.xlane.f32.xlu0 %v399_v41 }
 0x10f   : > { %415 = vadd.xlane.f32.xlu1 %v400_v40 }
 0x17f   : > { %v380_v43 = vpop.xlane.xlu0 %379 }
 0x180   : > { %v388_v42 = vpop.xlane.xlu1 %387  ;;  %v418_v44 = vmul.f32 0.010416667, %v380_v43 }
 0x181   : > { %v422_v47 = vmul.f32 0.010416667, %v388_v42 }
 0x182   : > { %v434_v48 = vmul.f32 %v418_v44, %v418_v44  ;;  %v458_v15 = vsub.f32 %v926_v20, %v418_v44 }
 0x183   : > { %v378_v46 = vpop.xlane.xlu0 %377  ;;  %v438_v54 = vmul.f32 %v422_v47, %v422_v47  ;;  %v462_v33 = vsub.f32 %v928_v21, %v422_v47 }
 0x184   : > { %v404_v45 = vpop.xlane.xlu1 %403  ;;  %v966_v51 = vmul.f32 0.010416667, %v378_v46 }
 0x185   : > { %v426_v49 = vmul.f32 0.010416667, %v404_v45 }
 0x186   : > { %v433_v59 = vmul.f32 %v966_v51, %v966_v51 }
 0x187   : > { %v442_v50 = vsub.f32 %v426_v49, %v434_v48  ;;  %v386_v53 = vpop.xlane.xlu0 %385 }
 0x188   : > { %v412_v52 = vpop.xlane.xlu1 %411  ;;  %v970_v63 = vmul.f32 0.010416667, %v386_v53 }
 0x189   : > { %v450_v55 = vmax.f32 %v442_v50, 0.0  ;;  %v430_v56 = vmul.f32 0.010416667, %v412_v52  ;;  %v457_v52 = vsub.f32 %v932_v26, %v966_v51 }
 0x18a   : > { %v437_v5 = vmul.f32 %v970_v63, %v970_v63  ;;  %v461_v51 = vsub.f32 %v937_v30, %v970_v63 }
 0x18b   : > { %v466_v57 = vadd.f32 1e-05, %v450_v55  ;;  %v446_v58 = vsub.f32 %v430_v56, %v438_v54  ;;  %v402_v61 = vpop.xlane.xlu0 %401 }
 0x18c   : > { %v384_v60 = vpop.xlane.xlu1 %383  ;;  %v425_v0 = vmul.f32 0.010416667, %v402_v61 }
 0x18d   : > { %732 = vrsqrt.f32 %v466_v57  ;;  %v454_v62 = vmax.f32 %v446_v58, 0.0  ;;  %v974_v10 = vmul.f32 0.010416667, %v384_v60 }
 0x18e   : > { %v441_v2 = vsub.f32 %v425_v0, %v433_v59 }
 0x18f   : > { %v470_v1 = vadd.f32 1e-05, %v454_v62  ;;  %v410_v4 = vpop.xlane.xlu0 %409  ;;  %v436_v23 = vmul.f32 %v974_v10, %v974_v10  ;;  %v460_v30 = vsub.f32 %v941_v32, %v974_v10 }
 0x190   : > { %v392_v3 = vpop.xlane.xlu1 %391  ;;  %v449_v6 = vmax.f32 %v441_v2, 0.0  ;;  %v429_v7 = vmul.f32 0.010416667, %v410_v4 }
 0x191   : > { %734 = vrsqrt.f32 %v470_v1  ;;  %v992_v24 = vmul.f32 0.010416667, %v392_v3 }
 0x192   : > { %v465_v8 = vadd.f32 1e-05, %v449_v6  ;;  %v445_v9 = vsub.f32 %v429_v7, %v437_v5 }
 0x193   : > { %v390_v12 = vpop.xlane.xlu0 %389  ;;  %v440_v43 = vmul.f32 %v992_v24, %v992_v24 }
 0x194   : > { %v382_v11 = vpop.xlane.xlu1 %381  ;;  %736 = vrsqrt.f32 %v465_v8  ;;  %v453_v13 = vmax.f32 %v445_v9, 0.0  ;;  %v994_v20 = vmul.f32 0.010416667, %v390_v12 }
 0x195   : > { %v976_v14 = vmul.f32 0.010416667, %v382_v11 }
 0x196   : > { %v469_v18 = vadd.f32 1e-05, %v453_v13  ;;  %v439_v44 = vmul.f32 %v994_v20, %v994_v20  ;;  %v463_v32 = vsub.f32 %v954_v37, %v994_v20 }
 0x197   : > { %v733_v16 = vpop.eup %732  ;;  %v406_v27 = vpop.xlane.xlu0 %405  ;;  %v435_v28 = vmul.f32 %v976_v14, %v976_v14  ;;  %v459_v11 = vsub.f32 %v952_v36, %v976_v14 }
 0x198   : > { %v482_v22 = vmul.f32 %v733_v16, %v458_v15  ;;  %v408_v25 = vpop.xlane.xlu1 %407  ;;  %738 = vrsqrt.f32 %v469_v18  ;;  %v427_v31 = vmul.f32 0.010416667, %v406_v27  ;;  %v464_v16 = vsub.f32 %v946_v34, %v992_v24 }
 0x199   : > { %v428_v29 = vmul.f32 0.010416667, %v408_v25 }
 0x19a   : > { %v497_v35 = vmul.f32 %v983_v17, %v482_v22  ;;  %v443_v40 = vsub.f32 %v427_v31, %v435_v28 }
 0x19b   : > { %v735_v38 = vpop.eup %734  ;;  %v444_v39 = vsub.f32 %v428_v29, %v436_v23  ;;  %v414_v46 = vpop.xlane.xlu0 %413 }
 0x19c   : > { %v512_v41 = vadd.f32 %v988_v19, %v497_v35  ;;  %v486_v42 = vmul.f32 %v735_v38, %v462_v33  ;;  %v416_v45 = vpop.xlane.xlu1 %415  ;;  %v451_v49 = vmax.f32 %v443_v40, 0.0  ;;  %v431_v21 = vmul.f32 0.010416667, %v414_v46 }
 0x19d   : > { %v452_v48 = vmax.f32 %v444_v39, 0.0  ;;  %v432_v50 = vmul.f32 0.010416667, %v416_v45 }
 0x19e   : > { %v520_v47 = vmax.f32 %v512_v41, 0.0  ;;  %v501_v53 = vmul.f32 %v983_v17, %v486_v42  ;;  %v737_v54 = vpop.eup %736  ;;  %v467_v56 = vadd.f32 1e-05, %v451_v49  ;;  %v447_v58 = vsub.f32 %v431_v21, %v439_v44 }
 0x19f   : > { %v468_v55 = vadd.f32 1e-05, %v452_v48  ;;  %v448_v57 = vsub.f32 %v432_v50, %v440_v43  ;;  %v481_v60 = vmul.f32 %v737_v54, %v457_v52 }
 0x1a0   : > { %528 = vst [vmem:[%s1010_s14 + $0x8] sm:$0xff] %v520_v47  ;;  %v516_v59 = vadd.f32 %v988_v19, %v501_v53  ;;  %v455_v62 = vmax.f32 %v447_v58, 0.0 }
 0x1a1   : > { %740 = vrsqrt.f32 %v468_v55  ;;  %v456_v61 = vmax.f32 %v448_v57, 0.0  ;;  %v496_v0 = vmul.f32 %v983_v17, %v481_v60 }
 0x1a2   : > { %v524_v26 = vmax.f32 %v516_v59, 0.0  ;;  %742 = vrsqrt.f32 %v467_v56  ;;  %v739_v1 = vpop.eup %738  ;;  %v471_v3 = vadd.f32 1e-05, %v455_v62 }
 0x1a3   : > { %v472_v2 = vadd.f32 1e-05, %v456_v61  ;;  %v511_v4 = vadd.f32 %v988_v19, %v496_v0  ;;  %v485_v5 = vmul.f32 %v739_v1, %v461_v51 }
 0x1a4   : > { %532 = vst [vmem:[%s1010_s14 + $0x28] sm:$0xff] %v524_v26 }
 0x1a5   : > { %744 = vrsqrt.f32 %v472_v2  ;;  %v519_v6 = vmax.f32 %v511_v4, 0.0  ;;  %v500_v7 = vmul.f32 %v983_v17, %v485_v5 }
 0x1a6   : > { %746 = vrsqrt.f32 %v471_v3 }
 0x1a7   : > { %527 = vst [vmem:[%s1010_s14] sm:$0xff] %v519_v6  ;;  %v515_v8 = vadd.f32 %v988_v19, %v500_v7 }
 0x1a9   : > { %v523_v63 = vmax.f32 %v515_v8, 0.0 }
 0x1ab   : > { %v741_v9 = vpop.eup %740  ;;  %531 = vst [vmem:[%s1010_s14 + $0x20] sm:$0xff] %v523_v63 }
 0x1ac   : > { %v743_v12 = vpop.eup %742  ;;  %v484_v13 = vmul.f32 %v741_v9, %v460_v30 }
 0x1ad   : > { %v483_v15 = vmul.f32 %v743_v12, %v459_v11 }
 0x1ae   : > { %v499_v18 = vmul.f32 %v983_v17, %v484_v13 }
 0x1af   : > { %v745_v22 = vpop.eup %744  ;;  %v498_v10 = vmul.f32 %v983_v17, %v483_v15 }
 0x1b0   : > { %v747_v36 = vpop.eup %746  ;;  %v514_v14 = vadd.f32 %v988_v19, %v499_v18  ;;  %v488_v23 = vmul.f32 %v745_v22, %v464_v16 }
 0x1b1   : > { %v513_v25 = vadd.f32 %v988_v19, %v498_v10  ;;  %v487_v27 = vmul.f32 %v747_v36, %v463_v32 }
 0x1b2   : > { %v522_v34 = vmax.f32 %v514_v14, 0.0  ;;  %v503_v24 = vmul.f32 %v983_v17, %v488_v23 }
 0x1b3   : > { %v521_v28 = vmax.f32 %v513_v25, 0.0  ;;  %v502_v29 = vmul.f32 %v983_v17, %v487_v27 }
 0x1b4   : > { %530 = vst [vmem:[%s1010_s14 + $0x18] sm:$0xff] %v522_v34  ;;  %v518_v37 = vadd.f32 %v988_v19, %v503_v24 }
 0x1b5   : > { %529 = vst [vmem:[%s1010_s14 + $0x10] sm:$0xff] %v521_v28  ;;  %v517_v20 = vadd.f32 %v988_v19, %v502_v29 }
 0x1b6   : > { %v526_v31 = vmax.f32 %v518_v37, 0.0 }
 0x1b7   : > { %v525_v17 = vmax.f32 %v517_v20, 0.0 }
 0x1b8   : > { %534 = vst [vmem:[%s1010_s14 + $0x38] sm:$0xff] %v526_v31 }
 0x1b9   : > { %533 = vst [vmem:[%s1010_s14 + $0x30] sm:$0xff] %v525_v17 }
 0x1ba   : > { %761 = shalt.err (!%p758_p3)
}
 0x1bb   : > { %s762_s8 = scalar_lea.hbm %s1046_s25, 1024  ;;  %s766_s11 = scalar_lea.hbm %s1100_s5, 8192 }
 0x1bc   : > { %p763_p4 = scmp.ne.s32.totalorder %s1046_s25, %s762_s8  ;;  %p767_p9 = scmp.lt.u32.totalorder %s1046_s25, %s1100_s5 }
 0x1bd   : > { %p768_p10 = scmp.lt.u32.totalorder %s766_s11, %s762_s8  ;;  %p770_p12 = scmp.lt.u32.totalorder %s762_s8, %s1046_s25 }
 0x1be   : > { %p764_p7 = pnand %p763_p4, %p883_p5 }
 0x1bf   : > { %p769_p11 = por %p768_p10, %p767_p9 }
 0x1c0   : > { %p765_p8 = pneg %p764_p7 }
 0x1c1   : > { %p771_p13 = por %p770_p12, %p769_p11 }
 0x1c3   : > { %p772_p0 = pnand %p771_p13, %p765_p8 }
 0x1c5   : > { %775 = shalt.err (!%p772_p0)
}
 0x1c6   : > { %s813_s14 = smov 128   ;;  %s814_s15 = smov 8  }
 0x1c7   : > { %691 = dma.vmem_to_hbm [thread:$0]  (%p883_p5), %s1048_s16, 1024, %s1046_s25, %s1054_s22, %s813_s14, %s813_s14, %s814_s15  }
 0x1c8 PF: > { %p697_p1 = scmp.ge.s32.totalorder %s810_s21, 2  ;;  %s564_s17 = sand.u32 1, %s798_s18  }
 0x1c9   : > { %s565_s23 = scalar_lea.sflag [#allocation3], %s564_s17 }
 0x1ca   : > { %p694_p2 = pnand %p697_p1, %p887_p6 }
 0x1cc   : > { %793 = dma.done.wait (!%p694_p2), %s565_s23, 1024  }
 0x1cd   : > { %795 = vsyncadd (!%p694_p2), %s565_s23, 4294966272  ;;  %p15_p3 = scmp.ge.s32.totalorder %s870_s24, 10   ;;  %s1103_s18 = smov %s802_s19 }
 0x1ce   : > { %s1104_s19 = smov %s806_s20  ;;  %s1105_s20 = smov %s881_s27 }
 0x1cf   : > { %s1106_s21 = smov %s870_s24  ;;  %17 = sbr.rel (!%p15_p3) target bundleno = 3 (0x3), region = 75 }
 0x1d6   :  { %570 = vsyncpa [#allocation3], 1 }
 0x1d7   :  { %572 = vsyncpa [#allocation3 + $0x1], 1 }

</bundles_post_ra>
